<compile_context>
chip_gen: v7x
topology: tpu7x:2x2x1
jax: 0.10.0
libtpu: 0.0.40
codegen_flags: <defaults>
</compile_context>

<pallas_src>
import functools

import jax
import jax.numpy as jnp
from jax.experimental import pallas as pl
from jax.experimental.pallas import tpu as pltpu


def _round_up(x, m):
    return (x + m - 1) // m * m


# Roughly: per-grid-step overhead (~0.35 us) expressed in "equivalent batch
# columns" for this ~28 B/column memory-bound kernel. Used only to pick tiles.
_STEP_OVERHEAD_COLS = 8192


def _pick_block_b(batch, tile_b):
    """Largest-win batch tile: multiple of 128, <= tile_b, minimizing
    (total padded columns processed) + (#grid steps) * step-overhead."""
    n128 = max(1, _round_up(batch, 128) // 128)
    max_blocks = max(1, tile_b // 128)
    best_blocks, best_cost = 1, None
    for blocks in range(1, min(n128, max_blocks) + 1):
        steps = -(-n128 // blocks)          # ceil
        cost = steps * blocks * 128 + steps * _STEP_OVERHEAD_COLS
        if best_cost is None or cost < best_cost or (
                cost == best_cost and blocks > best_blocks):
            best_blocks, best_cost = blocks, cost
    return best_blocks * 128


def irisnet2_kernel(x_ref, w1_ref, w2_ref, w3_ref, b_ref, out_ref):
    # x_ref:   (4,  TB)   batch tile, batch on lanes
    # w1_ref:  (64, 4), w2_ref: (32, 64), w3_ref: (3, 32)   PyTorch (out, in) layout
    # b_ref:   (128, 1)   packed [b1 (64) | b2 (32) | b3 (3) | zero pad]
    # out_ref: (3,  TB)
    x = x_ref[...]                        # (4, TB)
    b = b_ref[...]                        # (128, 1)
    b1 = b[0:64, :]                       # (64, 1)
    b2 = b[64:96, :]                      # (32, 1)
    b3 = b[96:99, :]                      # (3, 1)

    # fc1 + relu: K=4 is far too shallow for the MXU -> 4 broadcast FMAs (VPU).
    w1 = w1_ref[...]                      # (64, 4)
    h1 = b1 + w1[:, 0:1] * x[0:1, :]      # (64, TB)
    for k in range(1, 4):
        h1 = h1 + w1[:, k:k + 1] * x[k:k + 1, :]
    h1 = jnp.maximum(h1, 0.0)

    # fc2 + relu (MXU, f32 accumulation, N = TB lane-dense).
    h2 = jnp.dot(w2_ref[...], h1, preferred_element_type=jnp.float32) + b2
    h2 = jnp.maximum(h2, 0.0)             # (32, TB)

    # fc3 (no activation).
    out = jnp.dot(w3_ref[...], h2, preferred_element_type=jnp.float32) + b3
    out_ref[...] = out.astype(out_ref.dtype)


@functools.partial(jax.jit, static_argnames=("tile_b",))
def irisnet2_forward(x, params, tile_b=2048):
    """x: (B, 4) f32. params: PyTorch-layout (out, in) weights and (out,) biases."""
    w1, b1, w2, b2, w3, b3 = params
    B = x.shape[0]

    block_b = _pick_block_b(B, tile_b)
    b_pad = _round_up(B, block_b)
    nb = b_pad // block_b

    # Batch onto the lane axis; zero-pad ragged batch (sliced off below).
    xt = x.T                                              # (4, B)
    if b_pad != B:
        xt = jnp.pad(xt, ((0, 0), (0, b_pad - B)))

    # Pack the three biases into one (128, 1) slab -> single resident input.
    b_packed = jnp.concatenate(
        [b1, b2, b3, jnp.zeros((128 - 64 - 32 - 3,), jnp.float32)]
    ).reshape(128, 1)

    out_t = pl.pallas_call(
        irisnet2_kernel,
        out_shape=jax.ShapeDtypeStruct((3, b_pad), jnp.float32),
        grid=(nb,),
        in_specs=[
            pl.BlockSpec((4, block_b), lambda i: (0, i)),   # x tile (streamed)
            pl.BlockSpec((64, 4), lambda i: (0, 0)),        # w1 (VMEM-resident)
            pl.BlockSpec((32, 64), lambda i: (0, 0)),       # w2 (VMEM-resident)
            pl.BlockSpec((3, 32), lambda i: (0, 0)),        # w3 (VMEM-resident)
            pl.BlockSpec((128, 1), lambda i: (0, 0)),       # packed biases
        ],
        out_specs=pl.BlockSpec((3, block_b), lambda i: (0, i)),
        compiler_params=pltpu.CompilerParams(
            dimension_semantics=("parallel",)),             # both TCs on v7x
    )(xt, w1, w2, w3, b_packed)

    return out_t[:, :B].T                                   # (B, 3)


def init_params(key):
    # Deterministic init mimicking PyTorch Linear's U(-1/sqrt(fan_in), ...),
    # stored in PyTorch layout: W (out, in), b (out,).
    ks = jax.random.split(key, 6)

    def linear(kw, kb, fan_in, fan_out):
        bound = 1.0 / (fan_in ** 0.5)
        w = jax.random.uniform(kw, (fan_out, fan_in), jnp.float32, -bound, bound)
        b = jax.random.uniform(kb, (fan_out,), jnp.float32, -bound, bound)
        return w, b

    w1, b1 = linear(ks[0], ks[1], 4, 64)
    w2, b2 = linear(ks[2], ks[3], 64, 32)
    w3, b3 = linear(ks[4], ks[5], 32, 3)
    return (w1, b1, w2, b2, w3, b3)


def reference_forward(x, params):
    w1, b1, w2, b2, w3, b3 = params
    h1 = jnp.maximum(jnp.dot(x, w1.T, precision="highest") + b1, 0.0)
    h2 = jnp.maximum(jnp.dot(h1, w2.T, precision="highest") + b2, 0.0)
    return jnp.dot(h2, w3.T, precision="highest") + b3


if __name__ == "__main__":
    key = jax.random.PRNGKey(0)
    k_x, k_x2, k_p = jax.random.split(key, 3)
    params = init_params(k_p)

    # Small batch (Iris has 4 features).
    x_small = jax.random.normal(k_x, (8, 4), dtype=jnp.float32)
    out_small = jax.block_until_ready(irisnet2_forward(x_small, params))
    ref_small = reference_forward(x_small, params)
    assert out_small.shape == (8, 3), out_small.shape
    assert jnp.allclose(out_small, ref_small, atol=1e-5, rtol=1e-5), "small-batch mismatch"

    # Ragged batch: exercises the batch grid + zero-padding path.
    x_big = jax.random.normal(k_x2, (300, 4), dtype=jnp.float32)
    out_big = jax.block_until_ready(irisnet2_forward(x_big, params))
    ref_big = reference_forward(x_big, params)
    assert out_big.shape == (300, 3), out_big.shape
    assert jnp.allclose(out_big, ref_big, atol=1e-5, rtol=1e-5), "big-batch mismatch"

    print("KERNEL_OK")
</pallas_src>

<mosaic_0001>
module attributes {stable_mosaic.version = 11 : i64} {
  func.func @irisnet2_kernel(%arg0: i32, %arg1: memref<4x128xf32, #tpu.memory_space<vmem>>, %arg2: memref<64x4xf32, #tpu.memory_space<vmem>>, %arg3: memref<32x64xf32, #tpu.memory_space<vmem>>, %arg4: memref<3x32xf32, #tpu.memory_space<vmem>>, %arg5: memref<128x1xf32, #tpu.memory_space<vmem>>, %arg6: memref<3x128xf32, #tpu.memory_space<vmem>>) attributes {dimension_semantics = [#tpu.dimension_semantics<parallel>], iteration_bounds = array<i64: 1>, scalar_prefetch = 0 : i64, scratch_operands = 0 : i64, tpu.core_type = #tpu.core_type<tc>, window_params = [{transform_indices = @transform_0, window_bounds = array<i64: 4, 128>}, {pipeline_mode = #tpu.pipeline_mode<synchronous>, transform_indices = @transform_1, window_bounds = array<i64: 64, 4>}, {pipeline_mode = #tpu.pipeline_mode<synchronous>, transform_indices = @transform_2, window_bounds = array<i64: 32, 64>}, {pipeline_mode = #tpu.pipeline_mode<synchronous>, transform_indices = @transform_3, window_bounds = array<i64: 3, 32>}, {pipeline_mode = #tpu.pipeline_mode<synchronous>, transform_indices = @transform_4, window_bounds = array<i64: 128, 1>}, {transform_indices = @transform_5, window_bounds = array<i64: 3, 128>}]} {
    %c0 = arith.constant 0 : index
    %c0_0 = arith.constant 0 : index
    %0 = vector.load %arg1[%c0, %c0_0] : memref<4x128xf32, #tpu.memory_space<vmem>>, vector<4x128xf32>
    %c0_1 = arith.constant 0 : index
    %c0_2 = arith.constant 0 : index
    %1 = vector.load %arg5[%c0_1, %c0_2] : memref<128x1xf32, #tpu.memory_space<vmem>>, vector<128x1xf32>
    %2 = vector.extract_strided_slice %1 {offsets = [0, 0], sizes = [64, 1], strides = [1, 1]} : vector<128x1xf32> to vector<64x1xf32>
    %3 = vector.extract_strided_slice %1 {offsets = [64, 0], sizes = [32, 1], strides = [1, 1]} : vector<128x1xf32> to vector<32x1xf32>
    %4 = vector.extract_strided_slice %1 {offsets = [96, 0], sizes = [3, 1], strides = [1, 1]} : vector<128x1xf32> to vector<3x1xf32>
    %c0_3 = arith.constant 0 : index
    %c0_4 = arith.constant 0 : index
    %5 = vector.load %arg2[%c0_3, %c0_4] : memref<64x4xf32, #tpu.memory_space<vmem>>, vector<64x4xf32>
    %6 = vector.extract_strided_slice %5 {offsets = [0, 0], sizes = [64, 1], strides = [1, 1]} : vector<64x4xf32> to vector<64x1xf32>
    %7 = vector.extract_strided_slice %0 {offsets = [0, 0], sizes = [1, 128], strides = [1, 1]} : vector<4x128xf32> to vector<1x128xf32>
    %8 = vector.broadcast %6 : vector<64x1xf32> to vector<64x128xf32>
    %9 = vector.broadcast %7 : vector<1x128xf32> to vector<64x128xf32>
    %10 = arith.mulf %8, %9 : vector<64x128xf32>
    %11 = vector.broadcast %2 : vector<64x1xf32> to vector<64x128xf32>
    %12 = arith.addf %11, %10 : vector<64x128xf32>
    %13 = vector.extract_strided_slice %5 {offsets = [0, 1], sizes = [64, 1], strides = [1, 1]} : vector<64x4xf32> to vector<64x1xf32>
    %14 = vector.extract_strided_slice %0 {offsets = [1, 0], sizes = [1, 128], strides = [1, 1]} : vector<4x128xf32> to vector<1x128xf32>
    %15 = vector.broadcast %13 : vector<64x1xf32> to vector<64x128xf32>
    %16 = vector.broadcast %14 : vector<1x128xf32> to vector<64x128xf32>
    %17 = arith.mulf %15, %16 : vector<64x128xf32>
    %18 = arith.addf %12, %17 : vector<64x128xf32>
    %19 = vector.extract_strided_slice %5 {offsets = [0, 2], sizes = [64, 1], strides = [1, 1]} : vector<64x4xf32> to vector<64x1xf32>
    %20 = vector.extract_strided_slice %0 {offsets = [2, 0], sizes = [1, 128], strides = [1, 1]} : vector<4x128xf32> to vector<1x128xf32>
    %21 = vector.broadcast %19 : vector<64x1xf32> to vector<64x128xf32>
    %22 = vector.broadcast %20 : vector<1x128xf32> to vector<64x128xf32>
    %23 = arith.mulf %21, %22 : vector<64x128xf32>
    %24 = arith.addf %18, %23 : vector<64x128xf32>
    %25 = vector.extract_strided_slice %5 {offsets = [0, 3], sizes = [64, 1], strides = [1, 1]} : vector<64x4xf32> to vector<64x1xf32>
    %26 = vector.extract_strided_slice %0 {offsets = [3, 0], sizes = [1, 128], strides = [1, 1]} : vector<4x128xf32> to vector<1x128xf32>
    %27 = vector.broadcast %25 : vector<64x1xf32> to vector<64x128xf32>
    %28 = vector.broadcast %26 : vector<1x128xf32> to vector<64x128xf32>
    %29 = arith.mulf %27, %28 : vector<64x128xf32>
    %30 = arith.addf %24, %29 : vector<64x128xf32>
    %cst = arith.constant 0.000000e+00 : f32
    %31 = vector.broadcast %cst : f32 to vector<64x128xf32>
    %32 = arith.maximumf %30, %31 : vector<64x128xf32>
    %c0_5 = arith.constant 0 : index
    %c0_6 = arith.constant 0 : index
    %33 = vector.load %arg3[%c0_5, %c0_6] : memref<32x64xf32, #tpu.memory_space<vmem>>, vector<32x64xf32>
    %cst_7 = arith.constant dense<0.000000e+00> : vector<32x128xf32>
    %34 = tpu.matmul %33, %32, %cst_7 {dimension_numbers = #tpu.dot_dimension_numbers<[1], [0], [0], [1], [0, 0, 1, 1], [], []>} : vector<32x64xf32>, vector<64x128xf32>, vector<32x128xf32> -> vector<32x128xf32>
    %35 = vector.broadcast %3 : vector<32x1xf32> to vector<32x128xf32>
    %36 = arith.addf %34, %35 : vector<32x128xf32>
    %cst_8 = arith.constant 0.000000e+00 : f32
    %37 = vector.broadcast %cst_8 : f32 to vector<32x128xf32>
    %38 = arith.maximumf %36, %37 : vector<32x128xf32>
    %c0_9 = arith.constant 0 : index
    %c0_10 = arith.constant 0 : index
    %39 = vector.load %arg4[%c0_9, %c0_10] : memref<3x32xf32, #tpu.memory_space<vmem>>, vector<3x32xf32>
    %cst_11 = arith.constant dense<0.000000e+00> : vector<3x128xf32>
    %40 = tpu.matmul %39, %38, %cst_11 {dimension_numbers = #tpu.dot_dimension_numbers<[1], [0], [0], [1], [0, 0, 1, 1], [], []>} : vector<3x32xf32>, vector<32x128xf32>, vector<3x128xf32> -> vector<3x128xf32>
    %41 = vector.broadcast %4 : vector<3x1xf32> to vector<3x128xf32>
    %42 = arith.addf %40, %41 : vector<3x128xf32>
    %c0_12 = arith.constant 0 : index
    %c0_13 = arith.constant 0 : index
    %43 = vector.load %arg6[%c0_12, %c0_13] : memref<3x128xf32, #tpu.memory_space<vmem>>, vector<3x128xf32>
    tpu.vector_store %arg6[%c0_12, %c0_13], %42 {strides = array<i32>} : memref<3x128xf32, #tpu.memory_space<vmem>>, vector<3x128xf32>,
    return
  }
  func.func @transform_0(%arg0: i32) -> (i32, i32) {
    %c0_i32 = arith.constant 0 : i32
    %c0_i32_0 = arith.constant 0 : i32
    return %c0_i32, %arg0 : i32, i32
  }
  func.func @transform_1(%arg0: i32) -> (i32, i32) {
    %c0_i32 = arith.constant 0 : i32
    %c0_i32_0 = arith.constant 0 : i32
    %c0_i32_1 = arith.constant 0 : i32
    return %c0_i32, %c0_i32_0 : i32, i32
  }
  func.func @transform_2(%arg0: i32) -> (i32, i32) {
    %c0_i32 = arith.constant 0 : i32
    %c0_i32_0 = arith.constant 0 : i32
    %c0_i32_1 = arith.constant 0 : i32
    return %c0_i32, %c0_i32_0 : i32, i32
  }
  func.func @transform_3(%arg0: i32) -> (i32, i32) {
    %c0_i32 = arith.constant 0 : i32
    %c0_i32_0 = arith.constant 0 : i32
    %c0_i32_1 = arith.constant 0 : i32
    return %c0_i32, %c0_i32_0 : i32, i32
  }
  func.func @transform_4(%arg0: i32) -> (i32, i32) {
    %c0_i32 = arith.constant 0 : i32
    %c0_i32_0 = arith.constant 0 : i32
    %c0_i32_1 = arith.constant 0 : i32
    return %c0_i32, %c0_i32_0 : i32, i32
  }
  func.func @transform_5(%arg0: i32) -> (i32, i32) {
    %c0_i32 = arith.constant 0 : i32
    %c0_i32_0 = arith.constant 0 : i32
    return %c0_i32, %arg0 : i32, i32
  }
}

</mosaic_0001>

<bundles_post_ra>
// kernel: irisnet2_forward.1
= control target key start
LH: loop header
LB: loop body
LE: loop exit
PB: predicated region body
PF: predicated region fallthrough
CT: control target
= control target key end

     0   :  { %v626_v0 = vmov 2   ;;  %v627_v1 = vmov 0   ;;  %v628_v7 = vmov 1   ;;  %v629_v14 = vmov 3   ;;  %s818_s4 = inlined_call_operand.vmem [shape: f32[128,1], index: 4, kind: input, shape index: {}]   ;;  %s819_s1 = inlined_call_operand.vmem [shape: f32[64,4], index: 1, kind: input, shape index: {}]   ;;  %s820_s2 = inlined_call_operand.vmem [shape: f32[32,64], index: 2, kind: input, shape index: {}]   ;;  %s821_s0 = inlined_call_operand.vmem [shape: f32[4,128], index: 0, kind: input, shape index: {}]   ;;  %s822_s3 = inlined_call_operand.vmem [shape: f32[3,32], index: 3, kind: input, shape index: {}]   ;;  %s823_s5 = inlined_call_operand.vmem [shape: f32[3,128], index: 5, kind: output, shape index: {}]  }
   0x1   :  { %609 = vset.pattern.permute.xlu0 %v626_v0  ;;  %601 = vset.pattern.permute.xlu1 %v627_v1  ;;  %v21_v2 = vld [vmem:[%s818_s4] sm:$0xff]  ;;  %v36_v3 = vld [vmem:[%s819_s1 + $0x10] sm:$0xff]  ;;  %v22_v4 = vld [vmem:[%s818_s4 + $0x8] sm:$0xff]  ;;  %vm330_vm0 = vcmask 523264   ;;  %v82_v35 = vlaneseq  ;;  %vm631_vm1 = vmmov 0   ;;  %vm438_vm2 = vcmask 261120  }
   0x2   :  { %96 = vperm.xlu1 %601, %v21_v2   ;;  %203 = vperm.xlu0 %609, %v36_v3   ;;  %v34_v5 = vld [vmem:[%s819_s1] sm:$0xff]  ;;  %v35_v6 = vld [vmem:[%s819_s1 + $0x8] sm:$0xff]  ;;  %v37_v8 = vld [vmem:[%s819_s1 + $0x18] sm:$0xff] }
   0x3   :  { %v23_v9 = vld [vmem:[%s818_s4 + $0x10] sm:$0xff]  ;;  %v26_v10 = vld [vmem:[%s818_s4 + $0x28] sm:$0xff]  ;;  %v41_v11 = vld [vmem:[%s819_s1 + $0x38] sm:$0xff]  ;;  %v83_v38 = vshrl.u32 %v82_v35, 7 }
   0x4   :  { %v24_v12 = vld [vmem:[%s818_s4 + $0x18] sm:$0xff]  ;;  %v27_v13 = vld [vmem:[%s818_s4 + $0x30] sm:$0xff]  ;;  %v38_v16 = vld [vmem:[%s819_s1 + $0x20] sm:$0xff] }
   0x5   :  { %v40_v15 = vld [vmem:[%s819_s1 + $0x30] sm:$0xff]  ;;  %v39_v17 = vld [vmem:[%s819_s1 + $0x28] sm:$0xff]  ;;  %v25_v18 = vld [vmem:[%s818_s4 + $0x20] sm:$0xff]  ;;  %v84_v41 = vsub.s32 0, %v83_v38  ;;  %v176_v46 = vsub.s32 1, %v83_v38  ;;  %v228_v48 = vsub.s32 2, %v83_v38 }
   0x6   :  { %101 = vperm.xlu1 %601, %v22_v4   ;;  %610 = vset.pattern.permute.xlu0 %v627_v1  ;;  %v28_v19 = vld [vmem:[%s818_s4 + $0x38] sm:$0xff]  ;;  %v306_v20 = vld [vmem:[%s820_s2] sm:$0xff]  ;;  %v30_v23 = vld [vmem:[%s818_s4 + $0x48] sm:$0xff]  ;;  %v280_v53 = vsub.s32 3, %v83_v38 }
   0x7   :  { %44 = vperm.xlu0 %610, %v34_v5   ;;  %555 = vmatprep.mubr.msk.f32.mxu0 %vm330_vm0, %v306_v20  ;;  %v29_v24 = vld [vmem:[%s818_s4 + $0x40] sm:$0xff]  ;;  %v31_v27 = vld [vmem:[%s818_s4 + $0x50] sm:$0xff]  ;;  %v32_v28 = vld [vmem:[%s818_s4 + $0x58] sm:$0xff] }
   0x8   :  { %v33_v31 = vld [vmem:[%s818_s4 + $0x60] sm:$0xff] }
   0x9   :  { %v20_v42 = vld [vmem:[%s821_s0] sm:$0xf] }
   0xa   :  { %602 = vset.pattern.permute.xlu1 %v628_v7  ;;  %v756_v45 = vrot.slane %v20_v42, %v84_v41  ;;  %v759_v50 = vrot.slane %v20_v42, %v176_v46  ;;  %v762_v54 = vrot.slane %v20_v42, %v228_v48  ;;  %v765_v60 = vrot.slane %v20_v42, %v280_v53 }
   0xb   :  { %147 = vperm.xlu1 %602, %v35_v6   ;;  %49 = vperm.xlu0 %610, %v35_v6  }
   0xf   :  { %603 = vset.pattern.permute.xlu1 %v627_v1  ;;  %59 = vperm.xlu0 %610, %v37_v8  }
  0x10   :  { %54 = vperm.xlu1 %603, %v36_v3  }
  0x13   :  { %106 = vperm.xlu0 %610, %v23_v9  }
  0x14   :  { %604 = vset.pattern.permute.xlu1 %v626_v0 }
  0x15   :  { %195 = vperm.xlu1 %604, %v34_v5  }
  0x17   :  { %121 = vperm.xlu0 %610, %v26_v10  }
  0x19   :  { %199 = vperm.xlu1 %604, %v35_v6  }
  0x1b   :  { %79 = vperm.xlu0 %610, %v41_v11  }
  0x1d   :  { %605 = vset.pattern.permute.xlu1 %v627_v1 }
  0x1e   :  { %111 = vperm.xlu1 %605, %v24_v12  }
  0x1f   :  { %126 = vperm.xlu0 %610, %v27_v13  }
  0x22   :  { %606 = vset.pattern.permute.xlu1 %v628_v7 }
  0x23   :  { %617 = vset.pattern.permute.xlu0 %v628_v7  ;;  %155 = vperm.xlu1 %606, %v37_v8  }
  0x24   :  { %143 = vperm.xlu0 %617, %v34_v5  }
  0x27   :  { %607 = vset.pattern.permute.xlu1 %v629_v14 }
  0x28   :  { %151 = vperm.xlu0 %617, %v36_v3   ;;  %247 = vperm.xlu1 %607, %v34_v5  }
  0x2c   :  { %167 = vperm.xlu0 %617, %v40_v15   ;;  %608 = vset.pattern.permute.xlu1 %v627_v1 }
  0x2d   :  { %64 = vperm.xlu1 %608, %v38_v16  }
  0x30   :  { %619 = vset.pattern.permute.xlu0 %v629_v14 }
  0x31   :  { %251 = vperm.xlu0 %619, %v35_v6   ;;  %69 = vperm.xlu1 %608, %v39_v17  }
  0x35   :  { %255 = vperm.xlu0 %619, %v36_v3   ;;  %611 = vset.pattern.permute.xlu1 %v626_v0 }
  0x36   :  { %207 = vperm.xlu1 %611, %v37_v8  }
  0x39   :  { %267 = vperm.xlu0 %619, %v39_v17  }
  0x3a   :  { %612 = vset.pattern.permute.xlu1 %v627_v1 }
  0x3b   :  { %116 = vperm.xlu1 %612, %v25_v18  }
  0x3d   :  { %271 = vperm.xlu0 %619, %v40_v15  }
  0x3f   :  { %613 = vset.pattern.permute.xlu1 %v628_v7 }
  0x40   :  { %159 = vperm.xlu1 %613, %v38_v16  }
  0x41   :  { %624 = vset.pattern.permute.xlu0 %v627_v1 }
  0x42   :  { %312 = vperm.xlu0 %624, %v29_v24  }
  0x44   :  { %163 = vperm.xlu1 %613, %v39_v17  }
  0x46   :  { %327 = vperm.xlu0 %624, %v32_v28  }
  0x48   :  { %614 = vset.pattern.permute.xlu1 %v629_v14 }
  0x49   :  { %259 = vperm.xlu1 %614, %v37_v8  }
  0x4d   :  { %615 = vset.pattern.permute.xlu1 %v627_v1 }
  0x4e   :  { %74 = vperm.xlu1 %615, %v40_v15  }
  0x52   :  { %616 = vset.pattern.permute.xlu1 %v626_v0 }
  0x53   :  { %211 = vperm.xlu1 %616, %v38_v16  }
  0x57   :  { %215 = vperm.xlu1 %616, %v39_v17  }
  0x5b   :  { %618 = vset.pattern.permute.xlu1 %v627_v1 }
  0x5c   :  { %131 = vperm.xlu1 %618, %v28_v19  }
  0x60   :  { %620 = vset.pattern.permute.xlu1 %v628_v7 }
  0x61   :  { %171 = vperm.xlu1 %620, %v41_v11  }
  0x65   :  { %621 = vset.pattern.permute.xlu1 %v629_v14 }
  0x66   :  { %263 = vperm.xlu1 %621, %v38_v16  }
  0x6a   :  { %622 = vset.pattern.permute.xlu1 %v626_v0 }
  0x6b   :  { %219 = vperm.xlu1 %622, %v40_v15  }
  0x6f   :  { %223 = vperm.xlu1 %622, %v41_v11  }
  0x73   :  { %623 = vset.pattern.permute.xlu1 %v629_v14 }
  0x74   :  { %275 = vperm.xlu1 %623, %v41_v11  }
  0x78   :  { %625 = vset.pattern.permute.xlu1 %v627_v1 }
  0x79   :  { %317 = vperm.xlu1 %625, %v30_v23  }
  0x7d   :  { %322 = vperm.xlu1 %625, %v31_v27  }
  0x81   :  { %v97_v21 = vpop.permute.xlu1 %96  ;;  %v730_v22 = vpop.permute.xlu0 %203  ;;  %435 = vperm.xlu1 %625, %v33_v31  }
  0x82   :  { %v232_v24 = vmul.f32 %v762_v54, %v730_v22 }
  0x85   :  { %v102_v25 = vpop.permute.xlu1 %101 }
  0x86   :  { %v45_v26 = vpop.permute.xlu0 %44 }
  0x87   :  { %v86_v49 = vmul.f32 %v756_v45, %v45_v26 }
  0x89   :  { %v134_v55 = vadd.f32 %v97_v21, %v86_v49 }
  0x8a   :  { %v148_v29 = vpop.permute.xlu1 %147  ;;  %v50_v30 = vpop.permute.xlu0 %49 }
  0x8b   :  { %v87_v56 = vmul.f32 %v756_v45, %v50_v30  ;;  %v179_v1 = vmul.f32 %v759_v50, %v148_v29 }
  0x8d   :  { %v135_v61 = vadd.f32 %v102_v25, %v87_v56 }
  0x8e   :  { %v60_v32 = vpop.permute.xlu0 %59 }
  0x8f   :  { %v55_v33 = vpop.permute.xlu1 %54  ;;  %v187_v5 = vadd.f32 %v179_v1, %v135_v61  ;;  %v89_v20 = vmul.f32 %v756_v45, %v60_v32 }
  0x90   :  { %v88_v17 = vmul.f32 %v756_v45, %v55_v33 }
  0x92   :  { %v107_v34 = vpop.permute.xlu0 %106 }
  0x93   :  { %v136_v21 = vadd.f32 %v107_v34, %v88_v17 }
  0x94   :  { %v196_v36 = vpop.permute.xlu1 %195 }
  0x95   :  { %v230_v62 = vmul.f32 %v762_v54, %v196_v36 }
  0x96   :  { %v747_v37 = vpop.permute.xlu0 %121 }
  0x98   :  { %v200_v39 = vpop.permute.xlu1 %199 }
  0x99   :  { %v231_v2 = vmul.f32 %v762_v54, %v200_v39 }
  0x9a   :  { %v749_v40 = vpop.permute.xlu0 %79 }
  0x9b   :  { %v239_v8 = vadd.f32 %v231_v2, %v187_v5 }
  0x9d   :  { %v112_v43 = vpop.permute.xlu1 %111 }
  0x9e   :  { %v754_v44 = vpop.permute.xlu0 %126  ;;  %v137_v28 = vadd.f32 %v112_v43, %v89_v20 }
  0xa2   :  { %v156_v47 = vpop.permute.xlu1 %155 }
  0xa3   :  { %v144_v51 = vpop.permute.xlu0 %143  ;;  %v181_v25 = vmul.f32 %v759_v50, %v156_v47 }
  0xa4   :  { %v178_v52 = vmul.f32 %v759_v50, %v144_v51 }
  0xa5   :  { %v189_v31 = vadd.f32 %v181_v25, %v137_v28  ;;  %v307_v28 = vld [vmem:[%s820_s2 + $0x8] sm:$0xff] }
  0xa6   :  { %v186_v59 = vadd.f32 %v178_v52, %v134_v55 }
  0xa7   :  { %v152_v57 = vpop.permute.xlu0 %151  ;;  %v248_v58 = vpop.permute.xlu1 %247 }
  0xa8   :  { %v238_v3 = vadd.f32 %v230_v62, %v186_v59  ;;  %v282_v4 = vmul.f32 %v765_v60, %v248_v58  ;;  %v180_v18 = vmul.f32 %v759_v50, %v152_v57 }
  0xaa   :  { %v290_v9 = vadd.f32 %v282_v4, %v238_v3  ;;  %v188_v26 = vadd.f32 %v180_v18, %v136_v21 }
  0xab   :  { %v168_v63 = vpop.permute.xlu0 %167 }
  0xac   :  { %v65_v0 = vpop.permute.xlu1 %64  ;;  %v298_v12 = vmax.f32 %v290_v9, 0.0  ;;  %v240_v33 = vadd.f32 %v232_v24, %v188_v26  ;;  %v184_v42 = vmul.f32 %v759_v50, %v168_v63 }
  0xad   :  { %v90_v59 = vmul.f32 %v756_v45, %v65_v0 }
  0xb0   :  { %v252_v6 = vpop.permute.xlu0 %251  ;;  %v70_v7 = vpop.permute.xlu1 %69 }
  0xb1   :  { %v283_v10 = vmul.f32 %v765_v60, %v252_v6  ;;  %v91_v52 = vmul.f32 %v756_v45, %v70_v7 }
  0xb3   :  { %v291_v11 = vadd.f32 %v283_v10, %v239_v8  ;;  %v139_v56 = vadd.f32 %v747_v37, %v91_v52 }
  0xb4   :  { %v256_v23 = vpop.permute.xlu0 %255 }
  0xb5   :  { %v299_v13 = vmax.f32 %v291_v11, 0.0  ;;  %v208_v14 = vpop.permute.xlu1 %207  ;;  %v284_v29 = vmul.f32 %v765_v60, %v256_v23 }
  0xb6   :  { %v233_v30 = vmul.f32 %v762_v54, %v208_v14 }
  0xb7   :  { %v572_v15 = vpack.c.bf16 %v299_v13, %v298_v12  ;;  %v292_v36 = vadd.f32 %v284_v29, %v240_v33  ;;  %v93_v13 = vmul.f32 %v756_v45, %v749_v40  ;;  %v630_v29 = vmov 0.0|0.0  }
  0xb8   :  { %v241_v38 = vadd.f32 %v233_v30, %v189_v31  ;;  %v268_v58 = vpop.permute.xlu0 %267  ;;  %588 = vmatprep.subr.bf16.mxu1 %v630_v29  ;;  %v632_v30 = vmov 0.0  }
  0xb9   :  { %573 = vmatprep.subr.bf16.mxu0 %v572_v15  ;;  %v300_v39 = vmax.f32 %v292_v36, 0.0  ;;  %v287_v3 = vmul.f32 %v765_v60, %v268_v58  ;;  %569 = vmatprep.mubr.msk.f32.mxu1 %vm631_vm1, %v632_v30 }
  0xba   :  { %v117_v16 = vpop.permute.xlu1 %116  ;;  %575 = vmatpush3.bf16.msra.mxu0 %v572_v15 }
  0xbb   :  { %v138_v63 = vadd.f32 %v117_v16, %v90_v59 }
  0xbc   :  { %v272_v16 = vpop.permute.xlu0 %271 }
  0xbd   :  { %v288_v21 = vmul.f32 %v765_v60, %v272_v16 }
  0xbf   :  { %v160_v19 = vpop.permute.xlu1 %159 }
  0xc0   :  { %v182_v61 = vmul.f32 %v759_v50, %v160_v19 }
  0xc1   :  { %v313_v31 = vpop.permute.xlu0 %312 }
  0xc2   :  { %v190_v4 = vadd.f32 %v182_v61, %v138_v63 }
  0xc3   :  { %v164_v27 = vpop.permute.xlu1 %163 }
  0xc4   :  { %v183_v55 = vmul.f32 %v759_v50, %v164_v27 }
  0xc8   :  { %v260_v35 = vpop.permute.xlu1 %259 }
  0xc9   :  { %v285_v32 = vmul.f32 %v765_v60, %v260_v35 }
  0xcb   :  { %v293_v34 = vadd.f32 %v285_v32, %v241_v38 }
  0xcd   :  { %v301_v41 = vmax.f32 %v293_v34, 0.0  ;;  %v75_v22 = vpop.permute.xlu1 %74 }
  0xce   :  { %v92_v46 = vmul.f32 %v756_v45, %v75_v22 }
  0xcf   :  { %v576_v43 = vpack.c.bf16 %v301_v41, %v300_v39  ;;  %v328_v39 = vpop.permute.xlu0 %327 }
  0xd0   :  { %v140_v47 = vadd.f32 %v754_v44, %v92_v46  ;;  %v191_v44 = vadd.f32 %v183_v55, %v139_v56 }
  0xd1   :  { %577 = vmatprep.subr.bf16.mxu0 %v576_v43 }
  0xd2   :  { %v212_v48 = vpop.permute.xlu1 %211  ;;  %579 = vmatpush3.bf16.msra.mxu0 %v576_v43  ;;  %v192_v49 = vadd.f32 %v184_v42, %v140_v47 }
  0xd3   :  { %v234_v1 = vmul.f32 %v762_v54, %v212_v48 }
  0xd5   :  { %v242_v6 = vadd.f32 %v234_v1, %v190_v4 }
  0xd6   :  { %v216_v51 = vpop.permute.xlu1 %215 }
  0xd7   :  { %v235_v57 = vmul.f32 %v762_v54, %v216_v51 }
  0xd9   :  { %v243_v2 = vadd.f32 %v235_v57, %v191_v44 }
  0xdb   :  { %v132_v53 = vpop.permute.xlu1 %131  ;;  %v295_v7 = vadd.f32 %v287_v3, %v243_v2 }
  0xdc   :  { %v141_v17 = vadd.f32 %v132_v53, %v93_v13  ;;  %v432_v53 = vld [vmem:[%s822_s3] sm:$0x7] }
  0xdd   :  { %v303_v9 = vmax.f32 %v295_v7, 0.0 }
  0xe0   :  { %v172_v62 = vpop.permute.xlu1 %171 }
  0xe1   :  { %v185_v14 = vmul.f32 %v759_v50, %v172_v62 }
  0xe3   :  { %v193_v20 = vadd.f32 %v185_v14, %v141_v17 }
  0xe5   :  { %v264_v5 = vpop.permute.xlu1 %263 }
  0xe6   :  { %v286_v37 = vmul.f32 %v765_v60, %v264_v5 }
  0xe8   :  { %v294_v8 = vadd.f32 %v286_v37, %v242_v6 }
  0xea   :  { %v302_v10 = vmax.f32 %v294_v8, 0.0  ;;  %v220_v0 = vpop.permute.xlu1 %219 }
  0xeb   :  { %v236_v11 = vmul.f32 %v762_v54, %v220_v0 }
  0xec   :  { %v580_v12 = vpack.c.bf16 %v303_v9, %v302_v10 }
  0xed   :  { %v244_v18 = vadd.f32 %v236_v11, %v192_v49 }
  0xee   :  { %v224_v15 = vpop.permute.xlu1 %223  ;;  %581 = vmatprep.subr.bf16.mxu0 %v580_v12 }
  0xef   :  { %583 = vmatpush3.bf16.msra.mxu0 %v580_v12  ;;  %v237_v19 = vmul.f32 %v762_v54, %v224_v15  ;;  %v296_v24 = vadd.f32 %v288_v21, %v244_v18  ;;  %v308_v54 = vld [vmem:[%s820_s2 + $0x10] sm:$0xff] }
  0xf1   :  { %v245_v25 = vadd.f32 %v237_v19, %v193_v20  ;;  %v304_v40 = vmax.f32 %v296_v24, 0.0 }
  0xf3   :  { %v276_v23 = vpop.permute.xlu1 %275 }
  0xf4   :  { %v289_v26 = vmul.f32 %v765_v60, %v276_v23  ;;  %v309_v60 = vld [vmem:[%s820_s2 + $0x18] sm:$0xff] }
  0xf6   :  { %v297_v27 = vadd.f32 %v289_v26, %v245_v25 }
  0xf8   :  { %v305_v45 = vmax.f32 %v297_v27, 0.0  ;;  %v318_v33 = vpop.permute.xlu1 %317 }
  0xfa   :  { %v584_v50 = vpack.c.bf16 %v305_v45, %v304_v40 }
  0xfc   :  { %585 = vmatprep.subr.bf16.mxu0 %v584_v50  ;;  %v323_v42 = vpop.permute.xlu1 %322 }
  0xfd   :  { %587 = vmatpush3.bf16.msra.mxu0 %v584_v50 }
 0x100   :  { %556 = vmatmul.mubr.msk.f32.vlgmr.msra.gmra.mrb[0].mxu0 %vm330_vm0, %v307_v28  ;;  %v436_v55 = vpop.permute.xlu1 %435 }
 0x101   :  { %558 = vmatprep.mubr.msk.f32.mxu0 %vm330_vm0, %v308_v54 }
 0x104   :  { %559 = vmatmul.mubr.msk.f32.gmra.mrb[2].mxu0 %vm330_vm0, %v309_v60 }
 0x1d3   :  { %v557_v35 = vpop.f32.mrb[0].mxu0 }
 0x1d4   :  { %v415_v36 = vadd.f32 %v557_v35, %v318_v33  ;;  %v409_v38 = vpop.f32.mrb[1].mxu0 }
 0x1d5   :  { %v410_v32 = vadd.f32 %v409_v38, %v313_v31 }
 0x1d6   :  { %v429_v34 = vmax.f32 %v415_v36, 0.0 }
 0x1d7   :  { %v428_v41 = vmax.f32 %v410_v32, 0.0  ;;  %v560_v22 = vpop.f32.mrb[2].mxu0 }
 0x1d8   :  { %v425_v46 = vadd.f32 %v560_v22, %v328_v39  ;;  %v419_v43 = vpop.f32.mrb[3].mxu0 }
 0x1d9   :  { %v420_v47 = vadd.f32 %v419_v43, %v323_v42  ;;  %v589_v48 = vpack.c.bf16 %v429_v34, %v428_v41 }
 0x1da   :  { %v431_v49 = vmax.f32 %v425_v46, 0.0 }
 0x1db   :  { %v430_v51 = vmax.f32 %v420_v47, 0.0  ;;  %590 = vmatpush3.bf16.msra.mxu1 %v589_v48 }
 0x1dc   :  { %591 = vmatprep.subr.bf16.mxu1 %v630_v29 }
 0x1dd   :  { %v592_v52 = vpack.c.bf16 %v431_v49, %v430_v51 }
 0x1df   :  { %593 = vmatpush3.bf16.msra.mxu1 %v592_v52 }
 0x1e2   :  { %570 = vmatmul.mubr.msk.f32.vlgmr.msra.gmra.mrb[0].mxu1 %vm438_vm2, %v432_v53 }
 0x2b5   :  { %v508_v56 = vpop.f32.mrb[0].mxu1 }
 0x2b6   :  { %v509_v57 = vadd.f32 %v508_v56, %v436_v55  ;;  %v571_v58 = vpop.f32.mrb[1].mxu1 }
 0x2b8   :  { %512 = vst [vmem:[%s823_s5] sm:$0x7] %v509_v57 }

</bundles_post_ra>
